<compile_context>
chip_gen: v5e
topology: v5e:2x2
jax: 0.10.0
libtpu: 0.0.40
codegen_flags: <defaults>
</compile_context>

<pallas_src>
import functools

import jax
import jax.numpy as jnp
from jax.experimental import pallas as pl
from jax.experimental.pallas import tpu as pltpu

LANES = 128
SUB_ROWS = 512  # inner-loop sub-chunk: 512 x 128 f32 = 256 KiB per operand


def _default_tile_rows():
    """Generation-aware block height (rows of 128 lanes)."""
    try:
        kind = jax.devices()[0].device_kind.lower()
    except Exception:
        return 4096
    if "v6" in kind or "v7" in kind:
        # 2 inputs x 2 buffers x 4 MiB = 16 MiB blocks, fits 32 MiB scoped VMEM.
        return 8192
    # v5e default scoped VMEM is 16 MiB -> 8 MiB of block buffers.
    return 4096


def _content_mse_kernel(x_ref, t_ref, out_ref, acc_ref, *,
                        tile_rows, sub_rows, total_rows, total_tiles,
                        tiles_per_chunk, has_row_tail, has_overhang):
    """Accumulate sum((x - t)^2) over one chunk of row-tiles.

    Grid = (num_chunks [parallel], tiles_per_chunk [arbitrary/reduction]).
    out_ref is a per-chunk (1, 1) SMEM scalar holding that chunk's partial sum.
    acc_ref is a single vreg-sized (8, 128) f32 VMEM accumulator.
    """
    c = pl.program_id(0)
    s = pl.program_id(1)
    g = c * tiles_per_chunk + s          # global tile index (may overhang)

    @pl.when(s == 0)
    def _init():
        acc_ref[...] = jnp.zeros_like(acc_ref)

    nsub = tile_rows // sub_rows         # static

    def accumulate(mask_rows):
        def body(k, carry):
            r0 = pl.multiple_of(k * sub_rows, sub_rows)
            xs = x_ref[pl.ds(r0, sub_rows), :].astype(jnp.float32)
            ts = t_ref[pl.ds(r0, sub_rows), :].astype(jnp.float32)
            d = xs - ts
            sq = d * d
            if mask_rows:
                # Only emitted for the last real tile: zero rows past the end
                # of the flattened input (partial-block DMA leaves stale data
                # in the tail of the VMEM buffer).
                base = (total_tiles - 1) * tile_rows
                row_ids = base + r0 + jax.lax.broadcasted_iota(
                    jnp.int32, (sub_rows, LANES), 0)
                sq = jnp.where(row_ids < total_rows, sq, jnp.float32(0.0))
            # Pure VALU tree into the vreg-sized accumulator; no full-tile
            # accumulator load/store traffic and no per-step XLU reduction.
            acc_ref[...] += jnp.sum(
                sq.reshape(sub_rows // 8, 8, LANES), axis=0)
            return carry

        jax.lax.fori_loop(0, nsub, body, 0)

    if has_row_tail or has_overhang:
        last_real = total_tiles - 1
        interior_limit = last_real if has_row_tail else total_tiles

        @pl.when(g < interior_limit)
        def _interior():
            accumulate(mask_rows=False)

        if has_row_tail:
            @pl.when(g == last_real)
            def _tail():
                accumulate(mask_rows=True)
        # g >= total_tiles (megacore overhang tile): contribute nothing.
    else:
        accumulate(mask_rows=False)

    @pl.when(s == pl.num_programs(1) - 1)
    def _flush():
        out_ref[0, 0] = jnp.sum(acc_ref[...])


def content_loss_forward(x, target, *, tile_rows=None,
                         min_pallas_elems=1 << 16, force_pallas=False):
    """Returns (input_passthrough, mse_loss) mirroring ContentLoss.forward."""
    assert x.shape == target.shape, "input and target must have the same shape"
    n_elems = x.size
    rows = n_elems // LANES              # full 128-lane rows

    if (n_elems < min_pallas_elems and not force_pallas) or rows == 0:
        # Tiny content-layer activations: fused XLA reduction beats any
        # pallas_call launch overhead.
        d = x.astype(jnp.float32) - target.astype(jnp.float32)
        return x, jnp.mean(d * d)

    if tile_rows is None:
        tile_rows = _default_tile_rows()
    # Keep the block height a multiple of the inner sub-chunk.
    tile_rows = max(SUB_ROWS, (tile_rows // SUB_ROWS) * SUB_ROWS)

    main = rows * LANES
    if main == n_elems:
        # Free reshape of a contiguous array -- no copies.
        x2d = x.reshape(rows, LANES)
        t2d = target.reshape(rows, LANES)
        x_flat = t_flat = None
    else:
        # Rare ragged case: kernel covers the first rows*128 elements, the
        # <128 element tail is added by XLA below (no whole-array jnp.pad).
        x_flat = x.reshape(-1)
        t_flat = target.reshape(-1)
        x2d = x_flat[:main].reshape(rows, LANES)
        t2d = t_flat[:main].reshape(rows, LANES)

    # Block height: big streaming tiles, rounded to SUB_ROWS; never bigger
    # than needed to cover the array.
    tr = min(tile_rows, SUB_ROWS * pl.cdiv(rows, SUB_ROWS))
    total_tiles = pl.cdiv(rows, tr)
    has_row_tail = (rows % tr) != 0

    # Always split into 2 chunks when there is more than one tile so the v7x
    # megacore can use both TensorCores (overhang tile skipped in-kernel).
    num_chunks = 2 if total_tiles >= 2 else 1
    tiles_per_chunk = pl.cdiv(total_tiles, num_chunks)
    has_overhang = num_chunks * tiles_per_chunk > total_tiles

    kernel = functools.partial(
        _content_mse_kernel,
        tile_rows=tr, sub_rows=min(SUB_ROWS, tr), total_rows=rows,
        total_tiles=total_tiles, tiles_per_chunk=tiles_per_chunk,
        has_row_tail=has_row_tail, has_overhang=has_overhang)

    if has_overhang:
        def row_block(c, s):
            # Clamp the overhang tile onto the last real block; its
            # contribution is skipped inside the kernel.
            return (jnp.minimum(c * tiles_per_chunk + s, total_tiles - 1), 0)
    else:
        def row_block(c, s):
            return (c * tiles_per_chunk + s, 0)

    itemsize = jnp.dtype(x.dtype).itemsize
    cost = pl.CostEstimate(flops=3 * main, transcendentals=0,
                           bytes_accessed=2 * main * itemsize + 4 * num_chunks)

    partials = pl.pallas_call(
        kernel,
        out_shape=jax.ShapeDtypeStruct((num_chunks, 1), jnp.float32),
        grid_spec=pltpu.PrefetchScalarGridSpec(
            num_scalar_prefetch=0,
            grid=(num_chunks, tiles_per_chunk),
            in_specs=[
                pl.BlockSpec((tr, LANES), row_block),
                pl.BlockSpec((tr, LANES), row_block),
            ],
            out_specs=pl.BlockSpec((1, 1), lambda c, s: (c, 0),
                                   memory_space=pltpu.SMEM),
            scratch_shapes=[pltpu.VMEM((8, LANES), jnp.float32)],
        ),
        compiler_params=pltpu.CompilerParams(
            dimension_semantics=("parallel", "arbitrary"),
        ),
        cost_estimate=cost,
    )(x2d, t2d)

    total = jnp.sum(partials)
    if main != n_elems:
        dt = x_flat[main:].astype(jnp.float32) - t_flat[main:].astype(jnp.float32)
        total = total + jnp.sum(dt * dt)

    loss = total / jnp.float32(n_elems)
    # Forward returns the input unchanged (identity pass-through).
    return x, loss


if __name__ == "__main__":
    key = jax.random.PRNGKey(0)

    def ref_mse(a, b):
        d = a.astype(jnp.float32) - b.astype(jnp.float32)
        return jnp.mean(d * d)

    cases = [
        # (shape, kwargs)
        ((2, 4, 16, 16), dict()),                                  # tiny: XLA fallback
        ((2, 4, 16, 16), dict(force_pallas=True)),                 # single padded block, masked
        ((2, 64, 64, 64), dict()),                                 # big single-tile streaming path
        ((2, 64, 64, 64), dict(tile_rows=512)),                    # 8 tiles, 2 parallel chunks
        ((2, 3, 128, 200), dict(tile_rows=512)),                   # odd tile count -> overhang skip + row tail
        ((1, 3, 300, 301), dict(force_pallas=True)),               # ragged lanes -> XLA tail + masked block
    ]

    for idx, (shape, kw) in enumerate(cases):
        k1, k2 = jax.random.split(jax.random.fold_in(key, idx))
        x = jax.random.normal(k1, shape, dtype=jnp.float32)
        target = jax.random.normal(k2, shape, dtype=jnp.float32)

        out, loss = content_loss_forward(x, target, **kw)
        out = jax.block_until_ready(out)
        loss = jax.block_until_ready(loss)

        ref = ref_mse(x, target)
        assert jnp.allclose(loss, ref, rtol=1e-4, atol=1e-6), (shape, kw, loss, ref)
        assert out.shape == x.shape and jnp.array_equal(out, x)

    print("KERNEL_OK")
</pallas_src>

<mosaic_0001>
module attributes {stable_mosaic.version = 11 : i64} {
  func.func @_content_mse_kernel(%arg0: i32, %arg1: i32, %arg2: memref<512x128xf32, #tpu.memory_space<vmem>>, %arg3: memref<512x128xf32, #tpu.memory_space<vmem>>, %arg4: memref<1x1xf32, #tpu.memory_space<smem>>, %arg5: memref<8x128xf32, #tpu.memory_space<vmem>>) attributes {dimension_semantics = [#tpu.dimension_semantics<parallel>, #tpu.dimension_semantics<arbitrary>], iteration_bounds = array<i64: 1, 1>, scalar_prefetch = 0 : i64, scratch_operands = 1 : i64, tpu.core_type = #tpu.core_type<tc>, window_params = [{transform_indices = @transform_0, window_bounds = array<i64: 512, 128>}, {transform_indices = @transform_1, window_bounds = array<i64: 512, 128>}, {transform_indices = @transform_2, window_bounds = array<i64: 1, 1>}]} {
    %c1_i32 = arith.constant 1 : i32
    %0 = arith.muli %arg0, %c1_i32 : i32
    %1 = arith.addi %0, %arg1 : i32
    %c0_i32 = arith.constant 0 : i32
    %2 = arith.cmpi eq, %arg1, %c0_i32 : i32
    %3 = arith.extui %2 : i1 to i32
    %c0_i32_0 = arith.constant 0 : i32
    %4 = arith.cmpi ne, %3, %c0_i32_0 : i32
    scf.if %4 {
      %cst = arith.constant 0.000000e+00 : f32
      %14 = vector.broadcast %cst : f32 to vector<8x128xf32>
      %c0 = arith.constant 0 : index
      %c0_7 = arith.constant 0 : index
      %15 = vector.load %arg5[%c0, %c0_7] : memref<8x128xf32, #tpu.memory_space<vmem>>, vector<8x128xf32>
      tpu.vector_store %arg5[%c0, %c0_7], %14 {strides = array<i32>} : memref<8x128xf32, #tpu.memory_space<vmem>>, vector<8x128xf32>,
    } else {
    }
    %c0_i32_1 = arith.constant 0 : i32
    %5 = arith.cmpi slt, %1, %c0_i32_1 : i32
    %6 = arith.extui %5 : i1 to i32
    %c0_i32_2 = arith.constant 0 : i32
    %7 = arith.cmpi ne, %6, %c0_i32_2 : i32
    scf.if %7 {
      %c0_i32_7 = arith.constant 0 : i32
      %c512_i32 = arith.constant 512 : i32
      %14 = arith.muli %c0_i32_7, %c512_i32 : i32
      %15 = tpu.assume_multiple %14, 512 : i32
      %16 = arith.index_cast %15 : i32 to index
      %c0 = arith.constant 0 : index
      %17 = vector.load %arg2[%16, %c0] : memref<512x128xf32, #tpu.memory_space<vmem>>, vector<512x128xf32>
      %18 = arith.index_cast %15 : i32 to index
      %c0_8 = arith.constant 0 : index
      %19 = vector.load %arg3[%18, %c0_8] : memref<512x128xf32, #tpu.memory_space<vmem>>, vector<512x128xf32>
      %20 = arith.subf %17, %19 : vector<512x128xf32>
      %21 = arith.mulf %20, %20 : vector<512x128xf32>
      %c0_9 = arith.constant 0 : index
      %c0_10 = arith.constant 0 : index
      %22 = vector.load %arg5[%c0_9, %c0_10] : memref<8x128xf32, #tpu.memory_space<vmem>>, vector<8x128xf32>
      %23 = vector.shape_cast %21 : vector<512x128xf32> to vector<64x8x128xf32>
      %cst = arith.constant dense<0.000000e+00> : vector<8x128xf32>
      %24 = vector.multi_reduction <add>, %23, %cst [0] : vector<64x8x128xf32> to vector<8x128xf32>
      %25 = arith.addf %22, %24 : vector<8x128xf32>
      %c0_11 = arith.constant 0 : index
      %c0_12 = arith.constant 0 : index
      %26 = vector.load %arg5[%c0_11, %c0_12] : memref<8x128xf32, #tpu.memory_space<vmem>>, vector<8x128xf32>
      tpu.vector_store %arg5[%c0_11, %c0_12], %25 {strides = array<i32>} : memref<8x128xf32, #tpu.memory_space<vmem>>, vector<8x128xf32>,
      %c1_i32_13 = arith.constant 1 : i32
    } else {
    }
    %c0_i32_3 = arith.constant 0 : i32
    %8 = arith.cmpi eq, %1, %c0_i32_3 : i32
    %9 = arith.extui %8 : i1 to i32
    %c0_i32_4 = arith.constant 0 : i32
    %10 = arith.cmpi ne, %9, %c0_i32_4 : i32
    scf.if %10 {
      %c0_i32_7 = arith.constant 0 : i32
      %c512_i32 = arith.constant 512 : i32
      %14 = arith.muli %c0_i32_7, %c512_i32 : i32
      %15 = tpu.assume_multiple %14, 512 : i32
      %16 = arith.index_cast %15 : i32 to index
      %c0 = arith.constant 0 : index
      %17 = vector.load %arg2[%16, %c0] : memref<512x128xf32, #tpu.memory_space<vmem>>, vector<512x128xf32>
      %18 = arith.index_cast %15 : i32 to index
      %c0_8 = arith.constant 0 : index
      %19 = vector.load %arg3[%18, %c0_8] : memref<512x128xf32, #tpu.memory_space<vmem>>, vector<512x128xf32>
      %20 = arith.subf %17, %19 : vector<512x128xf32>
      %21 = arith.mulf %20, %20 : vector<512x128xf32>
      %c0_i32_9 = arith.constant 0 : i32
      %22 = arith.addi %c0_i32_9, %15 : i32
      %23 = tpu.iota {dimensions = array<i32: 0>} : vector<512x128xi32>
      %24 = vector.broadcast %22 : i32 to vector<512x128xi32>
      %25 = arith.addi %24, %23 : vector<512x128xi32>
      %c16_i32 = arith.constant 16 : i32
      %26 = vector.broadcast %c16_i32 : i32 to vector<512x128xi32>
      %27 = arith.cmpi slt, %25, %26 : vector<512x128xi32>
      %cst = arith.constant 0.000000e+00 : f32
      %28 = vector.broadcast %cst : f32 to vector<512x128xf32>
      %29 = arith.select %27, %21, %28 : vector<512x128xi1>, vector<512x128xf32>
      %c0_10 = arith.constant 0 : index
      %c0_11 = arith.constant 0 : index
      %30 = vector.load %arg5[%c0_10, %c0_11] : memref<8x128xf32, #tpu.memory_space<vmem>>, vector<8x128xf32>
      %31 = vector.shape_cast %29 : vector<512x128xf32> to vector<64x8x128xf32>
      %cst_12 = arith.constant dense<0.000000e+00> : vector<8x128xf32>
      %32 = vector.multi_reduction <add>, %31, %cst_12 [0] : vector<64x8x128xf32> to vector<8x128xf32>
      %33 = arith.addf %30, %32 : vector<8x128xf32>
      %c0_13 = arith.constant 0 : index
      %c0_14 = arith.constant 0 : index
      %34 = vector.load %arg5[%c0_13, %c0_14] : memref<8x128xf32, #tpu.memory_space<vmem>>, vector<8x128xf32>
      tpu.vector_store %arg5[%c0_13, %c0_14], %33 {strides = array<i32>} : memref<8x128xf32, #tpu.memory_space<vmem>>, vector<8x128xf32>,
      %c1_i32_15 = arith.constant 1 : i32
    } else {
    }
    %c0_i32_5 = arith.constant 0 : i32
    %11 = arith.cmpi eq, %arg1, %c0_i32_5 : i32
    %12 = arith.extui %11 : i1 to i32
    %c0_i32_6 = arith.constant 0 : i32
    %13 = arith.cmpi ne, %12, %c0_i32_6 : i32
    scf.if %13 {
      %c0 = arith.constant 0 : index
      %c0_7 = arith.constant 0 : index
      %14 = vector.load %arg5[%c0, %c0_7] : memref<8x128xf32, #tpu.memory_space<vmem>>, vector<8x128xf32>
      %15 = vector.shape_cast %14 : vector<8x128xf32> to vector<1x8x128xf32>
      %cst = arith.constant dense<0.000000e+00> : vector<1xf32>
      %16 = vector.multi_reduction <add>, %15, %cst [1, 2] : vector<1x8x128xf32> to vector<1xf32>
      %17 = vector.shape_cast %16 : vector<1xf32> to vector<1x1x1xf32>
      %18 = vector.extract %17[0, 0, 0] : f32 from vector<1x1x1xf32>
      %c0_8 = arith.constant 0 : index
      %c0_9 = arith.constant 0 : index
      %19 = memref.load %arg4[%c0_8, %c0_9] : memref<1x1xf32, #tpu.memory_space<smem>>
      memref.store %18, %arg4[%c0_8, %c0_9] : memref<1x1xf32, #tpu.memory_space<smem>>
    } else {
    }
    return
  }
  func.func @transform_0(%arg0: i32, %arg1: i32) -> (i32, i32) {
    %c1_i32 = arith.constant 1 : i32
    %0 = arith.muli %arg0, %c1_i32 : i32
    %1 = arith.addi %0, %arg1 : i32
    %c0_i32 = arith.constant 0 : i32
    %c0_i32_0 = arith.constant 0 : i32
    return %1, %c0_i32 : i32, i32
  }
  func.func @transform_1(%arg0: i32, %arg1: i32) -> (i32, i32) {
    %c1_i32 = arith.constant 1 : i32
    %0 = arith.muli %arg0, %c1_i32 : i32
    %1 = arith.addi %0, %arg1 : i32
    %c0_i32 = arith.constant 0 : i32
    %c0_i32_0 = arith.constant 0 : i32
    return %1, %c0_i32 : i32, i32
  }
  func.func @transform_2(%arg0: i32, %arg1: i32) -> (i32, i32) {
    %c0_i32 = arith.constant 0 : i32
    %c0_i32_0 = arith.constant 0 : i32
    return %arg0, %c0_i32 : i32, i32
  }
}

</mosaic_0001>

<bundles_post_ra>
// kernel: tpu_custom_call.1
= control target key start
LH: loop header
LB: loop body
LE: loop exit
PB: predicated region body
PF: predicated region fallthrough
CT: control target
= control target key end

     0   :  { %7 = vsyncpa [#allocation4], 0  ;;  %s1120_s0 = inlined_call_operand.hbm [shape: f32[16,128], index: 0, kind: input, shape index: {}]   ;;  %s1121_s1 = inlined_call_operand.hbm [shape: f32[16,128], index: 1, kind: input, shape index: {}]   ;;  %s1122_s2 = inlined_call_operand.hbm [shape: f32[1,1], index: 2, kind: output, shape index: {}]  }
   0x1   :  { %8 = vsyncpa [#allocation7], 0 }
   0x2   :  { %9 = vsyncpa [#allocation5], 0 }
   0x3   :  { %18 = vsyncadd [#allocation4], 7936  ;;  %s23_s11 = sshll.u32 %s1120_s0, 4  ;;  %s1091_s12 = smov [#allocation3]   ;;  %s24_s11 = int_to_ptr.hbm [resolvable:$true] %s23_s11 }
   0x4   :  { %s25_s13 = sshll.u32 %s1091_s12, 4  ;;  %s1092_s14 = smov 128   ;;  %s26_s13 = int_to_ptr.vmem [resolvable:$true] %s25_s13 }
   0x5   :  { %s1093_s15 = smov 8  }
   0x6   :  { %31 = dma.hbm_to_vmem [thread:$0]  %s24_s11, 256, %s26_s13, [#allocation4], %s1092_s14, %s1092_s14, %s1093_s15  }
   0x7   :  { %40 = vsyncadd [#allocation7], 7936  ;;  %s45_s18 = sshll.u32 %s1121_s1, 4  ;;  %s1094_s19 = smov [#allocation6]   ;;  %s46_s18 = int_to_ptr.hbm [resolvable:$true] %s45_s18 }
   0x8   :  { %s47_s20 = sshll.u32 %s1094_s19, 4  ;;  %s48_s20 = int_to_ptr.vmem [resolvable:$true] %s47_s20 }
   0x9   :  { %53 = dma.hbm_to_vmem [thread:$0]  %s46_s18, 256, %s48_s20, [#allocation7], %s1092_s14, %s1092_s14, %s1093_s15  }
   0xa   :  { %1085 = dma.done.wait [#allocation4], 8192  }
   0xb   :  { %1086 = vsyncadd [#allocation4], 4294959104 }
   0xc   :  { %1087 = dma.done.wait [#allocation7], 8192  }
   0xd   :  { %1088 = vsyncadd [#allocation7], 4294959104  ;;  %v406_v0 = vld [vmem:[#allocation3] sm:$0xff]  ;;  %v407_v1 = vld [vmem:[#allocation3 + $0x8] sm:$0xff]  ;;  %s1006_s21 = sshll.u32 %s1122_s2, 4  ;;  %s1095_s23 = smov [#allocation8]   ;;  %s1007_s21 = int_to_ptr.hbm [resolvable:$true] %s1006_s21 }
   0xe   :  { %v470_v2 = vld [vmem:[#allocation6] sm:$0xff]  ;;  %v471_v3 = vld [vmem:[#allocation6 + $0x8] sm:$0xff] }
   0xf   :  { %v534_v4 = vsub.f32 %v406_v0, %v470_v2  ;;  %v535_v5 = vsub.f32 %v407_v1, %v471_v3 }
  0x11   :  { %v598_v6 = vmul.f32 %v534_v4, %v534_v4  ;;  %v599_v7 = vmul.f32 %v535_v5, %v535_v5 }
  0x13   :  { %v921_v8 = vadd.f32 %v599_v7, %v598_v6 }
  0x15   :  { %990 = vadd.xlane.f32.xlu0 %v921_v8 }
  0x88   :  { %v991_v9 = vpop.xlane.xlu0 %990 }
  0x89   :  { %v992_v10 = vrot.slane %v991_v9, 4 }
  0x8b   :  { %v993_v11 = vadd.f32 %v992_v10, %v991_v9 }
  0x8d   :  { %v994_v12 = vrot.slane %v993_v11, 2 }
  0x8f   :  { %v995_v13 = vadd.f32 %v994_v12, %v993_v11 }
  0x91   :  { %v996_v14 = vrot.slane %v995_v13, 1 }
  0x93   :  { %v997_v15 = vadd.f32 %v996_v14, %v995_v13 }
  0x95   :  { %1018 = vpush %v997_v15 }
  0xc6   :  { %s1019_s22 = spop %1018 }
  0xc7   :  { %1000 = sst [smem:[#allocation8]] %s1019_s22 }
  0xc8   :  { %1009 = dma.smem_to_hbm %s1095_s23, 16, %s1007_s21, [#allocation5]  }
  0xc9   :  { %1089 = dma.done.wait [#allocation5], 16  }
  0xca   :  { %1090 = vsyncadd [#allocation5], 4294967280 }
  0xcb   :  { %1014 = sfence }
  0xcc   :  { %1015 = vsyncpa [#allocation4], 1 }
  0xcd   :  { %1016 = vsyncpa [#allocation7], 1 }
  0xce   :  { %1017 = vsyncpa [#allocation5], 1 }

</bundles_post_ra>
